<compile_context>
chip_gen: v5e
topology: v5e:2x2
jax: 0.10.0
libtpu: 0.0.40
codegen_flags: <defaults>
</compile_context>

<pallas_src>
import functools

import jax
import jax.numpy as jnp
from jax.experimental import pallas as pl
from jax.experimental.pallas import tpu as pltpu


_LANE = 128
_VPU_C_MAX = 8          # VPU path for C <= this (and 128-aligned pixel count)
_ROW_CHUNK = 8          # sublane chunk processed per step inside the VPU kernel


def _cdiv(a, b):
    return -(-a // b)


def _vmem_limit(nbytes):
    # Derived from the actual tile footprint (x2 margin), clamped so it is
    # valid on every generation (v7x has only 64 MiB of physical VMEM).
    return int(min(max(2 * nbytes, 16 << 20), 64 << 20))


# ---------------------------------------------------------------------------
# Kernels
# ---------------------------------------------------------------------------
def _head_vpu_kernel(x_ref, w1_ref, b1_ref, w2_ref, b2_ref, o_ref, *, c,
                     apply_sigmoid):
    # x_ref : [C, tr, L] (input dtype, VMEM) -- pixels dense on sublanes+lanes
    # w1_ref: [C, C] f32 (SMEM, BN-folded), b1_ref: [C] (SMEM)
    # w2_ref: [C]    f32 (SMEM),            b2_ref: [1] (SMEM)
    # o_ref : [tr, L] f32 (VMEM)
    tr = o_ref.shape[0]
    # Hoist the (tiny) scalar weights out of the chunk loop.
    w1 = [[w1_ref[co, ci] for ci in range(c)] for co in range(c)]
    b1 = [b1_ref[co] for co in range(c)]
    w2 = [w2_ref[co] for co in range(c)]
    b2 = b2_ref[0]
    # Walk the big tile in 8-sublane chunks: bounds vreg live ranges while the
    # per-grid-step DMA stays ~1-2 MiB; rows are re-loaded per chunk (vld slots
    # have headroom vs the VALU slots).
    for r0 in range(0, tr, _ROW_CHUNK):
        rs = min(_ROW_CHUNK, tr - r0)
        sl = slice(r0, r0 + rs)
        out = None
        for co in range(c):
            acc = None
            for ci in range(c):
                xv = x_ref[ci, sl, :].astype(jnp.float32)  # cast after DMA (v5e)
                t = xv * w1[co][ci]
                acc = t if acc is None else acc + t
            z = jnp.maximum(acc + b1[co], 0.0)              # conv1 + BN + ReLU
            t2 = z * w2[co]                                 # conv2 contribution
            out = t2 if out is None else out + t2
        y = out + b2
        if apply_sigmoid:
            y = jax.nn.sigmoid(y)
        o_ref[sl, :] = y.astype(o_ref.dtype)


def _head_mxu_kernel(x_ref, w1_ref, b1_ref, w2_ref, b2_ref, o_ref, *,
                     apply_sigmoid):
    # x_ref : [C, tp] (f32 or bf16, VMEM)
    # w1_ref: [C, C] same dtype as x (VMEM, BN-folded)
    # b1_ref: [C, 1] f32, w2_ref: [1, C] f32 (VMEM), b2_ref: [1] f32 (SMEM)
    # o_ref : [1, tp] f32 (VMEM)
    x = x_ref[...]
    z = jnp.dot(w1_ref[...], x, preferred_element_type=jnp.float32)  # [C, tp]
    z = jnp.maximum(z + b1_ref[...], 0.0)                            # BN + ReLU (f32)
    # C -> 1 reduction as a second MXU contraction (frees VALU/XLU slots).
    y = jnp.dot(w2_ref[...], z, preferred_element_type=jnp.float32)  # [1, tp]
    y = y + b2_ref[0]
    if apply_sigmoid:
        y = jax.nn.sigmoid(y)
    o_ref[...] = y.astype(o_ref.dtype)


# ---------------------------------------------------------------------------
# Tiling helpers
# ---------------------------------------------------------------------------
def _vpu_tiling(N, C, P, in_bytes, *, target_buf_bytes=(3 << 19)):  # ~1.5 MiB
    # Lane slab: largest of 1024/512/256/128 dividing P (lane-dense stores).
    L = _LANE
    for cand in (1024, 512, 256):
        if P % cand == 0:
            L = cand
            break
    R = P // L
    tr = max(_ROW_CHUNK, (target_buf_bytes // (C * L * in_bytes)) // 8 * 8)
    if tr >= R:
        tr = R
    # Prefer >=2 grid steps so both v7x TensorCores get work.
    while N * _cdiv(R, tr) < 2:
        new_tr = (tr // 2) // 8 * 8
        if new_tr < 8 or new_tr > R or new_tr >= tr:
            break
        tr = new_tr
    return L, R, tr


def _mxu_tiling(N, C, P, in_bytes, *, target_buf_bytes=(4 << 20), max_tp=16384):
    if P <= _LANE:
        return P                                   # single full block
    tp = (target_buf_bytes // (C * in_bytes)) // _LANE * _LANE
    tp = max(_LANE, min(tp, max_tp, (P // _LANE) * _LANE))
    while N * _cdiv(P, tp) < 2 and tp > _LANE:
        tp = max(_LANE, (tp // 2) // _LANE * _LANE)
    return tp


# ---------------------------------------------------------------------------
# Fused head: conv1+BN+ReLU+conv2(+bias)(+sigmoid) on (N, C, P) -> (N, 1, P)
# ---------------------------------------------------------------------------
def _fused_head(x_ncp, w1f, b1f, w2, b2, *, apply_sigmoid):
    N, C, P = x_ncp.shape
    in_dtype = x_ncp.dtype
    in_bytes = jnp.dtype(in_dtype).itemsize

    if C <= _VPU_C_MAX and P % _LANE == 0:
        # ---- small-C path: VPU FMAs on channel-outer dense pixel tiles ----
        L, R, tr = _vpu_tiling(N, C, P, in_bytes)
        x4 = x_ncp.reshape(N, C, R, L)            # free reshape (contiguous)
        grid = (N, _cdiv(R, tr))
        footprint = 2 * C * tr * L * in_bytes + 2 * max(tr, 8) * L * 4

        out = pl.pallas_call(
            functools.partial(_head_vpu_kernel, c=C,
                              apply_sigmoid=apply_sigmoid),
            out_shape=jax.ShapeDtypeStruct((N, R, L), jnp.float32),
            grid_spec=pltpu.PrefetchScalarGridSpec(
                num_scalar_prefetch=0,
                grid=grid,
                in_specs=[
                    pl.BlockSpec((pl.Squeezed(), C, tr, L),
                                 lambda n, i: (n, 0, i, 0)),
                    pl.BlockSpec(memory_space=pltpu.MemorySpace.SMEM),  # w1f
                    pl.BlockSpec(memory_space=pltpu.MemorySpace.SMEM),  # b1f
                    pl.BlockSpec(memory_space=pltpu.MemorySpace.SMEM),  # w2
                    pl.BlockSpec(memory_space=pltpu.MemorySpace.SMEM),  # b2
                ],
                out_specs=pl.BlockSpec((pl.Squeezed(), tr, L),
                                       lambda n, i: (n, i, 0)),
            ),
            compiler_params=pltpu.CompilerParams(
                dimension_semantics=("parallel", "parallel"),
                vmem_limit_bytes=_vmem_limit(footprint)),
        )(x4, w1f, b1f, w2, b2)
        return out.reshape(N, 1, P)

    # ---- large-C / lane-ragged path: MXU dots on [C, tp] tiles ------------
    tp = _mxu_tiling(N, C, P, in_bytes)
    grid = (N, _cdiv(P, tp))
    w1_mat = w1f.astype(in_dtype) if in_dtype == jnp.bfloat16 else w1f
    footprint = (2 * C * tp * in_bytes + 2 * 8 * tp * 4
                 + 2 * C * C * in_bytes + 4 * C * _LANE * 4)

    out = pl.pallas_call(
        functools.partial(_head_mxu_kernel, apply_sigmoid=apply_sigmoid),
        out_shape=jax.ShapeDtypeStruct((N, 1, P), jnp.float32),
        grid_spec=pltpu.PrefetchScalarGridSpec(
            num_scalar_prefetch=0,
            grid=grid,
            in_specs=[
                pl.BlockSpec((pl.Squeezed(), C, tp), lambda n, i: (n, 0, i)),
                pl.BlockSpec((C, C), lambda n, i: (0, 0)),   # w1 (x dtype)
                pl.BlockSpec((C, 1), lambda n, i: (0, 0)),   # b1 (f32)
                pl.BlockSpec((1, C), lambda n, i: (0, 0)),   # w2 row (f32)
                pl.BlockSpec(memory_space=pltpu.MemorySpace.SMEM),  # b2
            ],
            out_specs=pl.BlockSpec((pl.Squeezed(), 1, tp),
                                   lambda n, i: (n, 0, i)),
        ),
        compiler_params=pltpu.CompilerParams(
            dimension_semantics=("parallel", "parallel"),
            vmem_limit_bytes=_vmem_limit(footprint)),
    )(x_ncp, w1_mat, b1f.reshape(C, 1), w2.reshape(1, C), b2)
    return out


# ---------------------------------------------------------------------------
# Bilinear upsampling (align_corners=True) as separable interp matrices
# ---------------------------------------------------------------------------
def _interp_matrix(n_in, n_out):
    if n_out == 1:
        pos = jnp.zeros((1,), jnp.float32)
    else:
        pos = jnp.arange(n_out, dtype=jnp.float32) * ((n_in - 1) / (n_out - 1))
    lo = jnp.clip(jnp.floor(pos).astype(jnp.int32), 0, max(n_in - 1, 0))
    hi = jnp.minimum(lo + 1, n_in - 1)
    frac = pos - lo.astype(jnp.float32)
    return (jax.nn.one_hot(lo, n_in, dtype=jnp.float32) * (1.0 - frac)[:, None]
            + jax.nn.one_hot(hi, n_in, dtype=jnp.float32) * frac[:, None])


# ---------------------------------------------------------------------------
# Parameters (deterministic, matching module shapes)
# ---------------------------------------------------------------------------
def init_output_params(key, in_chs):
    ks = jax.random.split(key, 6)
    return {
        "w1": jax.random.normal(ks[0], (in_chs, in_chs, 1, 1), jnp.float32) * 0.1,
        "gamma": 1.0 + 0.1 * jax.random.normal(ks[1], (in_chs,), jnp.float32),
        "beta": 0.1 * jax.random.normal(ks[2], (in_chs,), jnp.float32),
        "mean": 0.05 * jax.random.normal(ks[3], (in_chs,), jnp.float32),
        "var": jnp.abs(jax.random.normal(ks[4], (in_chs,), jnp.float32)) + 1.0,
        "w2": jax.random.normal(ks[5], (1, in_chs, 1, 1), jnp.float32) * 0.1,
        "b2": jnp.array([0.05], jnp.float32),
        "eps": 1e-5,
    }


# ---------------------------------------------------------------------------
# Forward
# ---------------------------------------------------------------------------
def output_forward(feat_nchw, params, *, scale=1):
    N, C, H, W = feat_nchw.shape
    if feat_nchw.dtype not in (jnp.float32, jnp.bfloat16):
        feat_nchw = feat_nchw.astype(jnp.float32)
    # NCHW is already [C, pixels]-contiguous per image: the reshape is free and
    # the input dtype is preserved (bf16 tiles DMA at half the HBM bytes).
    x = feat_nchw.reshape(N, C, H * W)

    # Fold BatchNorm (eval semantics) into conv1's weight + a per-channel bias.
    s = params["gamma"] / jnp.sqrt(params["var"] + params["eps"])
    w1f = (params["w1"].reshape(C, C) * s[:, None]).astype(jnp.float32)
    b1f = (params["beta"] - params["mean"] * s).astype(jnp.float32)
    w2 = params["w2"].reshape(C).astype(jnp.float32)
    b2 = params["b2"].reshape(1).astype(jnp.float32)

    # Fused conv1+BN+ReLU+conv2(+bias); conv2 commutes with the bilinear
    # upsample (interp rows sum to 1), so it runs at the ORIGINAL resolution on
    # C channels and only the single-channel logit map is upsampled.  Sigmoid
    # is fused in-kernel only when scale == 1 (it must follow the upsample).
    head = _fused_head(x, w1f, b1f, w2, b2, apply_sigmoid=(scale == 1))

    if scale == 1:
        return head.reshape(N, 1, H, W)

    Ho, Wo = H * scale, W * scale
    y = head.reshape(N, H, W)
    My = _interp_matrix(H, Ho)                      # [Ho, H]
    Mx = _interp_matrix(W, Wo)                      # [Wo, W]
    hp = jax.lax.Precision.HIGHEST
    # Separable bilinear upsample as two small MXU-friendly matmuls; sigmoid is
    # applied directly so XLA fuses it into the second matmul's epilogue.
    # TODO(synk): fuse the separable upsample + sigmoid into one lane-dense
    # Pallas kernel to drop the remaining intermediate HBM pass.
    y = jnp.einsum("oh,nhw->now", My, y, precision=hp)
    y = jnp.einsum("now,pw->nop", y, Mx, precision=hp)
    return jax.nn.sigmoid(y)[:, None, :, :]


# ---------------------------------------------------------------------------
# Pure-JAX reference (original op order: conv1->BN->ReLU->up->conv2->sigmoid)
# ---------------------------------------------------------------------------
def output_forward_ref(feat_nchw, params, *, scale=1):
    N, C, H, W = feat_nchw.shape
    hp = jax.lax.Precision.HIGHEST
    x = feat_nchw.astype(jnp.float32)
    z = jnp.einsum("oc,nchw->nohw", params["w1"].reshape(C, C), x, precision=hp)
    s = params["gamma"] / jnp.sqrt(params["var"] + params["eps"])
    b = params["beta"] - params["mean"] * s
    z = jnp.maximum(z * s[None, :, None, None] + b[None, :, None, None], 0.0)
    if scale != 1:
        My = _interp_matrix(H, H * scale)
        Mx = _interp_matrix(W, W * scale)
        z = jnp.einsum("oh,nchw->ncow", My, z, precision=hp)
        z = jnp.einsum("ncow,pw->ncop", z, Mx, precision=hp)
    y = jnp.einsum("c,nchw->nhw", params["w2"].reshape(C), z, precision=hp)
    y = y[:, None, :, :] + params["b2"].reshape(1, 1, 1, 1)
    return jax.nn.sigmoid(y)


if __name__ == "__main__":
    key = jax.random.PRNGKey(0)
    k1, k2, k3, k4, k5, k6, k7, k8 = jax.random.split(key, 8)

    fwd = jax.jit(output_forward, static_argnames=("scale",))

    # -- test 1: module-default config (scale=1), small-C VPU path ----------
    N, C, H, W = 2, 4, 16, 16
    feat = jax.random.normal(k1, (N, C, H, W), jnp.float32)
    params = init_output_params(k2, C)
    out1 = jax.block_until_ready(fwd(feat, params, scale=1))
    ref1 = output_forward_ref(feat, params, scale=1)
    assert out1.shape == (N, 1, H, W), out1.shape
    assert float(jnp.max(jnp.abs(out1 - ref1))) < 1e-4

    # -- test 2: scale=2 (conv2 commuted ahead of the bilinear upsample) ----
    out2 = jax.block_until_ready(fwd(feat, params, scale=2))
    ref2 = output_forward_ref(feat, params, scale=2)
    assert out2.shape == (N, 1, 2 * H, 2 * W), out2.shape
    assert float(jnp.max(jnp.abs(out2 - ref2))) < 1e-4

    # -- test 3: wide-channel MXU path (f32, P smaller than a lane tile) ----
    N3, C3, H3, W3 = 1, 128, 8, 8
    feat3 = jax.random.normal(k3, (N3, C3, H3, W3), jnp.float32)
    params3 = init_output_params(k4, C3)
    out3 = jax.block_until_ready(fwd(feat3, params3, scale=1))
    ref3 = output_forward_ref(feat3, params3, scale=1)
    assert out3.shape == (N3, 1, H3, W3), out3.shape
    # Loose tolerance: in-kernel f32 MXU matmul vs HIGHEST-precision XLA ref.
    assert float(jnp.max(jnp.abs(out3 - ref3))) < 2e-2

    # -- test 4: ragged pixel count (no wrapper pad; partial boundary tile) -
    N4, C4, H4, W4 = 2, 16, 20, 20          # P = 400, not a multiple of 128
    feat4 = jax.random.normal(k5, (N4, C4, H4, W4), jnp.float32)
    params4 = init_output_params(k6, C4)
    out4 = jax.block_until_ready(fwd(feat4, params4, scale=1))
    ref4 = output_forward_ref(feat4, params4, scale=1)
    assert out4.shape == (N4, 1, H4, W4), out4.shape
    assert float(jnp.max(jnp.abs(out4 - ref4))) < 2e-2

    # -- test 5: bf16 activations stay bf16 through the DMA + bf16 MXU ------
    N5, C5, H5, W5 = 2, 128, 16, 16
    feat5 = jax.random.normal(k7, (N5, C5, H5, W5),
                              jnp.float32).astype(jnp.bfloat16)
    params5 = init_output_params(k8, C5)
    out5 = jax.block_until_ready(fwd(feat5, params5, scale=1))
    ref5 = output_forward_ref(feat5, params5, scale=1)
    assert out5.shape == (N5, 1, H5, W5), out5.shape
    # bf16 weight/activation quantization vs f32 reference.
    assert float(jnp.max(jnp.abs(out5 - ref5))) < 3e-2

    print("KERNEL_OK")
</pallas_src>

<mosaic_0001>
module attributes {stable_mosaic.version = 11 : i64} {
  func.func @_head_vpu_kernel(%arg0: i32, %arg1: i32, %arg2: memref<1x4x1x256xf32, #tpu.memory_space<vmem>>, %arg3: memref<4x4xf32, #tpu.memory_space<smem>>, %arg4: memref<4xf32, #tpu.memory_space<smem>>, %arg5: memref<4xf32, #tpu.memory_space<smem>>, %arg6: memref<1xf32, #tpu.memory_space<smem>>, %arg7: memref<1x1x256xf32, #tpu.memory_space<vmem>>) attributes {dimension_semantics = [#tpu.dimension_semantics<parallel>, #tpu.dimension_semantics<parallel>], iteration_bounds = array<i64: 2, 1>, scalar_prefetch = 0 : i64, scratch_operands = 0 : i64, tpu.core_type = #tpu.core_type<tc>, window_params = [{transform_indices = @transform_0, window_bounds = array<i64: 1, 4, 1, 256>}, {transform_indices = @transform_1, window_bounds = array<i64: 4, 4>}, {transform_indices = @transform_2, window_bounds = array<i64: 4>}, {transform_indices = @transform_3, window_bounds = array<i64: 4>}, {transform_indices = @transform_4, window_bounds = array<i64: 1>}, {transform_indices = @transform_5, window_bounds = array<i64: 1, 1, 256>}]} {
    %c0 = arith.constant 0 : index
    %c0_0 = arith.constant 0 : index
    %0 = memref.load %arg3[%c0, %c0_0] : memref<4x4xf32, #tpu.memory_space<smem>>
    %c0_1 = arith.constant 0 : index
    %c1 = arith.constant 1 : index
    %1 = memref.load %arg3[%c0_1, %c1] : memref<4x4xf32, #tpu.memory_space<smem>>
    %c0_2 = arith.constant 0 : index
    %c2 = arith.constant 2 : index
    %2 = memref.load %arg3[%c0_2, %c2] : memref<4x4xf32, #tpu.memory_space<smem>>
    %c0_3 = arith.constant 0 : index
    %c3 = arith.constant 3 : index
    %3 = memref.load %arg3[%c0_3, %c3] : memref<4x4xf32, #tpu.memory_space<smem>>
    %c1_4 = arith.constant 1 : index
    %c0_5 = arith.constant 0 : index
    %4 = memref.load %arg3[%c1_4, %c0_5] : memref<4x4xf32, #tpu.memory_space<smem>>
    %c1_6 = arith.constant 1 : index
    %c1_7 = arith.constant 1 : index
    %5 = memref.load %arg3[%c1_6, %c1_7] : memref<4x4xf32, #tpu.memory_space<smem>>
    %c1_8 = arith.constant 1 : index
    %c2_9 = arith.constant 2 : index
    %6 = memref.load %arg3[%c1_8, %c2_9] : memref<4x4xf32, #tpu.memory_space<smem>>
    %c1_10 = arith.constant 1 : index
    %c3_11 = arith.constant 3 : index
    %7 = memref.load %arg3[%c1_10, %c3_11] : memref<4x4xf32, #tpu.memory_space<smem>>
    %c2_12 = arith.constant 2 : index
    %c0_13 = arith.constant 0 : index
    %8 = memref.load %arg3[%c2_12, %c0_13] : memref<4x4xf32, #tpu.memory_space<smem>>
    %c2_14 = arith.constant 2 : index
    %c1_15 = arith.constant 1 : index
    %9 = memref.load %arg3[%c2_14, %c1_15] : memref<4x4xf32, #tpu.memory_space<smem>>
    %c2_16 = arith.constant 2 : index
    %c2_17 = arith.constant 2 : index
    %10 = memref.load %arg3[%c2_16, %c2_17] : memref<4x4xf32, #tpu.memory_space<smem>>
    %c2_18 = arith.constant 2 : index
    %c3_19 = arith.constant 3 : index
    %11 = memref.load %arg3[%c2_18, %c3_19] : memref<4x4xf32, #tpu.memory_space<smem>>
    %c3_20 = arith.constant 3 : index
    %c0_21 = arith.constant 0 : index
    %12 = memref.load %arg3[%c3_20, %c0_21] : memref<4x4xf32, #tpu.memory_space<smem>>
    %c3_22 = arith.constant 3 : index
    %c1_23 = arith.constant 1 : index
    %13 = memref.load %arg3[%c3_22, %c1_23] : memref<4x4xf32, #tpu.memory_space<smem>>
    %c3_24 = arith.constant 3 : index
    %c2_25 = arith.constant 2 : index
    %14 = memref.load %arg3[%c3_24, %c2_25] : memref<4x4xf32, #tpu.memory_space<smem>>
    %c3_26 = arith.constant 3 : index
    %c3_27 = arith.constant 3 : index
    %15 = memref.load %arg3[%c3_26, %c3_27] : memref<4x4xf32, #tpu.memory_space<smem>>
    %c0_28 = arith.constant 0 : index
    %16 = memref.load %arg4[%c0_28] : memref<4xf32, #tpu.memory_space<smem>>
    %c1_29 = arith.constant 1 : index
    %17 = memref.load %arg4[%c1_29] : memref<4xf32, #tpu.memory_space<smem>>
    %c2_30 = arith.constant 2 : index
    %18 = memref.load %arg4[%c2_30] : memref<4xf32, #tpu.memory_space<smem>>
    %c3_31 = arith.constant 3 : index
    %19 = memref.load %arg4[%c3_31] : memref<4xf32, #tpu.memory_space<smem>>
    %c0_32 = arith.constant 0 : index
    %20 = memref.load %arg5[%c0_32] : memref<4xf32, #tpu.memory_space<smem>>
    %c1_33 = arith.constant 1 : index
    %21 = memref.load %arg5[%c1_33] : memref<4xf32, #tpu.memory_space<smem>>
    %c2_34 = arith.constant 2 : index
    %22 = memref.load %arg5[%c2_34] : memref<4xf32, #tpu.memory_space<smem>>
    %c3_35 = arith.constant 3 : index
    %23 = memref.load %arg5[%c3_35] : memref<4xf32, #tpu.memory_space<smem>>
    %c0_36 = arith.constant 0 : index
    %24 = memref.load %arg6[%c0_36] : memref<1xf32, #tpu.memory_space<smem>>
    %c0_37 = arith.constant 0 : index
    %c0_38 = arith.constant 0 : index
    %c0_39 = arith.constant 0 : index
    %c0_40 = arith.constant 0 : index
    %25 = vector.load %arg2[%c0_37, %c0_38, %c0_39, %c0_40] : memref<1x4x1x256xf32, #tpu.memory_space<vmem>>, vector<1x1x1x256xf32>
    %26 = vector.shape_cast %25 : vector<1x1x1x256xf32> to vector<1x256xf32>
    %27 = vector.broadcast %0 : f32 to vector<1x256xf32>
    %28 = arith.mulf %26, %27 : vector<1x256xf32>
    %c0_41 = arith.constant 0 : index
    %c1_42 = arith.constant 1 : index
    %c0_43 = arith.constant 0 : index
    %c0_44 = arith.constant 0 : index
    %29 = vector.load %arg2[%c0_41, %c1_42, %c0_43, %c0_44] : memref<1x4x1x256xf32, #tpu.memory_space<vmem>>, vector<1x1x1x256xf32>
    %30 = vector.shape_cast %29 : vector<1x1x1x256xf32> to vector<1x256xf32>
    %31 = vector.broadcast %1 : f32 to vector<1x256xf32>
    %32 = arith.mulf %30, %31 : vector<1x256xf32>
    %33 = arith.addf %28, %32 : vector<1x256xf32>
    %c0_45 = arith.constant 0 : index
    %c2_46 = arith.constant 2 : index
    %c0_47 = arith.constant 0 : index
    %c0_48 = arith.constant 0 : index
    %34 = vector.load %arg2[%c0_45, %c2_46, %c0_47, %c0_48] : memref<1x4x1x256xf32, #tpu.memory_space<vmem>>, vector<1x1x1x256xf32>
    %35 = vector.shape_cast %34 : vector<1x1x1x256xf32> to vector<1x256xf32>
    %36 = vector.broadcast %2 : f32 to vector<1x256xf32>
    %37 = arith.mulf %35, %36 : vector<1x256xf32>
    %38 = arith.addf %33, %37 : vector<1x256xf32>
    %c0_49 = arith.constant 0 : index
    %c3_50 = arith.constant 3 : index
    %c0_51 = arith.constant 0 : index
    %c0_52 = arith.constant 0 : index
    %39 = vector.load %arg2[%c0_49, %c3_50, %c0_51, %c0_52] : memref<1x4x1x256xf32, #tpu.memory_space<vmem>>, vector<1x1x1x256xf32>
    %40 = vector.shape_cast %39 : vector<1x1x1x256xf32> to vector<1x256xf32>
    %41 = vector.broadcast %3 : f32 to vector<1x256xf32>
    %42 = arith.mulf %40, %41 : vector<1x256xf32>
    %43 = arith.addf %38, %42 : vector<1x256xf32>
    %44 = vector.broadcast %16 : f32 to vector<1x256xf32>
    %45 = arith.addf %43, %44 : vector<1x256xf32>
    %cst = arith.constant 0.000000e+00 : f32
    %46 = vector.broadcast %cst : f32 to vector<1x256xf32>
    %47 = arith.maximumf %45, %46 : vector<1x256xf32>
    %48 = vector.broadcast %20 : f32 to vector<1x256xf32>
    %49 = arith.mulf %47, %48 : vector<1x256xf32>
    %c0_53 = arith.constant 0 : index
    %c0_54 = arith.constant 0 : index
    %c0_55 = arith.constant 0 : index
    %c0_56 = arith.constant 0 : index
    %50 = vector.load %arg2[%c0_53, %c0_54, %c0_55, %c0_56] : memref<1x4x1x256xf32, #tpu.memory_space<vmem>>, vector<1x1x1x256xf32>
    %51 = vector.shape_cast %50 : vector<1x1x1x256xf32> to vector<1x256xf32>
    %52 = vector.broadcast %4 : f32 to vector<1x256xf32>
    %53 = arith.mulf %51, %52 : vector<1x256xf32>
    %c0_57 = arith.constant 0 : index
    %c1_58 = arith.constant 1 : index
    %c0_59 = arith.constant 0 : index
    %c0_60 = arith.constant 0 : index
    %54 = vector.load %arg2[%c0_57, %c1_58, %c0_59, %c0_60] : memref<1x4x1x256xf32, #tpu.memory_space<vmem>>, vector<1x1x1x256xf32>
    %55 = vector.shape_cast %54 : vector<1x1x1x256xf32> to vector<1x256xf32>
    %56 = vector.broadcast %5 : f32 to vector<1x256xf32>
    %57 = arith.mulf %55, %56 : vector<1x256xf32>
    %58 = arith.addf %53, %57 : vector<1x256xf32>
    %c0_61 = arith.constant 0 : index
    %c2_62 = arith.constant 2 : index
    %c0_63 = arith.constant 0 : index
    %c0_64 = arith.constant 0 : index
    %59 = vector.load %arg2[%c0_61, %c2_62, %c0_63, %c0_64] : memref<1x4x1x256xf32, #tpu.memory_space<vmem>>, vector<1x1x1x256xf32>
    %60 = vector.shape_cast %59 : vector<1x1x1x256xf32> to vector<1x256xf32>
    %61 = vector.broadcast %6 : f32 to vector<1x256xf32>
    %62 = arith.mulf %60, %61 : vector<1x256xf32>
    %63 = arith.addf %58, %62 : vector<1x256xf32>
    %c0_65 = arith.constant 0 : index
    %c3_66 = arith.constant 3 : index
    %c0_67 = arith.constant 0 : index
    %c0_68 = arith.constant 0 : index
    %64 = vector.load %arg2[%c0_65, %c3_66, %c0_67, %c0_68] : memref<1x4x1x256xf32, #tpu.memory_space<vmem>>, vector<1x1x1x256xf32>
    %65 = vector.shape_cast %64 : vector<1x1x1x256xf32> to vector<1x256xf32>
    %66 = vector.broadcast %7 : f32 to vector<1x256xf32>
    %67 = arith.mulf %65, %66 : vector<1x256xf32>
    %68 = arith.addf %63, %67 : vector<1x256xf32>
    %69 = vector.broadcast %17 : f32 to vector<1x256xf32>
    %70 = arith.addf %68, %69 : vector<1x256xf32>
    %cst_69 = arith.constant 0.000000e+00 : f32
    %71 = vector.broadcast %cst_69 : f32 to vector<1x256xf32>
    %72 = arith.maximumf %70, %71 : vector<1x256xf32>
    %73 = vector.broadcast %21 : f32 to vector<1x256xf32>
    %74 = arith.mulf %72, %73 : vector<1x256xf32>
    %75 = arith.addf %49, %74 : vector<1x256xf32>
    %c0_70 = arith.constant 0 : index
    %c0_71 = arith.constant 0 : index
    %c0_72 = arith.constant 0 : index
    %c0_73 = arith.constant 0 : index
    %76 = vector.load %arg2[%c0_70, %c0_71, %c0_72, %c0_73] : memref<1x4x1x256xf32, #tpu.memory_space<vmem>>, vector<1x1x1x256xf32>
    %77 = vector.shape_cast %76 : vector<1x1x1x256xf32> to vector<1x256xf32>
    %78 = vector.broadcast %8 : f32 to vector<1x256xf32>
    %79 = arith.mulf %77, %78 : vector<1x256xf32>
    %c0_74 = arith.constant 0 : index
    %c1_75 = arith.constant 1 : index
    %c0_76 = arith.constant 0 : index
    %c0_77 = arith.constant 0 : index
    %80 = vector.load %arg2[%c0_74, %c1_75, %c0_76, %c0_77] : memref<1x4x1x256xf32, #tpu.memory_space<vmem>>, vector<1x1x1x256xf32>
    %81 = vector.shape_cast %80 : vector<1x1x1x256xf32> to vector<1x256xf32>
    %82 = vector.broadcast %9 : f32 to vector<1x256xf32>
    %83 = arith.mulf %81, %82 : vector<1x256xf32>
    %84 = arith.addf %79, %83 : vector<1x256xf32>
    %c0_78 = arith.constant 0 : index
    %c2_79 = arith.constant 2 : index
    %c0_80 = arith.constant 0 : index
    %c0_81 = arith.constant 0 : index
    %85 = vector.load %arg2[%c0_78, %c2_79, %c0_80, %c0_81] : memref<1x4x1x256xf32, #tpu.memory_space<vmem>>, vector<1x1x1x256xf32>
    %86 = vector.shape_cast %85 : vector<1x1x1x256xf32> to vector<1x256xf32>
    %87 = vector.broadcast %10 : f32 to vector<1x256xf32>
    %88 = arith.mulf %86, %87 : vector<1x256xf32>
    %89 = arith.addf %84, %88 : vector<1x256xf32>
    %c0_82 = arith.constant 0 : index
    %c3_83 = arith.constant 3 : index
    %c0_84 = arith.constant 0 : index
    %c0_85 = arith.constant 0 : index
    %90 = vector.load %arg2[%c0_82, %c3_83, %c0_84, %c0_85] : memref<1x4x1x256xf32, #tpu.memory_space<vmem>>, vector<1x1x1x256xf32>
    %91 = vector.shape_cast %90 : vector<1x1x1x256xf32> to vector<1x256xf32>
    %92 = vector.broadcast %11 : f32 to vector<1x256xf32>
    %93 = arith.mulf %91, %92 : vector<1x256xf32>
    %94 = arith.addf %89, %93 : vector<1x256xf32>
    %95 = vector.broadcast %18 : f32 to vector<1x256xf32>
    %96 = arith.addf %94, %95 : vector<1x256xf32>
    %cst_86 = arith.constant 0.000000e+00 : f32
    %97 = vector.broadcast %cst_86 : f32 to vector<1x256xf32>
    %98 = arith.maximumf %96, %97 : vector<1x256xf32>
    %99 = vector.broadcast %22 : f32 to vector<1x256xf32>
    %100 = arith.mulf %98, %99 : vector<1x256xf32>
    %101 = arith.addf %75, %100 : vector<1x256xf32>
    %c0_87 = arith.constant 0 : index
    %c0_88 = arith.constant 0 : index
    %c0_89 = arith.constant 0 : index
    %c0_90 = arith.constant 0 : index
    %102 = vector.load %arg2[%c0_87, %c0_88, %c0_89, %c0_90] : memref<1x4x1x256xf32, #tpu.memory_space<vmem>>, vector<1x1x1x256xf32>
    %103 = vector.shape_cast %102 : vector<1x1x1x256xf32> to vector<1x256xf32>
    %104 = vector.broadcast %12 : f32 to vector<1x256xf32>
    %105 = arith.mulf %103, %104 : vector<1x256xf32>
    %c0_91 = arith.constant 0 : index
    %c1_92 = arith.constant 1 : index
    %c0_93 = arith.constant 0 : index
    %c0_94 = arith.constant 0 : index
    %106 = vector.load %arg2[%c0_91, %c1_92, %c0_93, %c0_94] : memref<1x4x1x256xf32, #tpu.memory_space<vmem>>, vector<1x1x1x256xf32>
    %107 = vector.shape_cast %106 : vector<1x1x1x256xf32> to vector<1x256xf32>
    %108 = vector.broadcast %13 : f32 to vector<1x256xf32>
    %109 = arith.mulf %107, %108 : vector<1x256xf32>
    %110 = arith.addf %105, %109 : vector<1x256xf32>
    %c0_95 = arith.constant 0 : index
    %c2_96 = arith.constant 2 : index
    %c0_97 = arith.constant 0 : index
    %c0_98 = arith.constant 0 : index
    %111 = vector.load %arg2[%c0_95, %c2_96, %c0_97, %c0_98] : memref<1x4x1x256xf32, #tpu.memory_space<vmem>>, vector<1x1x1x256xf32>
    %112 = vector.shape_cast %111 : vector<1x1x1x256xf32> to vector<1x256xf32>
    %113 = vector.broadcast %14 : f32 to vector<1x256xf32>
    %114 = arith.mulf %112, %113 : vector<1x256xf32>
    %115 = arith.addf %110, %114 : vector<1x256xf32>
    %c0_99 = arith.constant 0 : index
    %c3_100 = arith.constant 3 : index
    %c0_101 = arith.constant 0 : index
    %c0_102 = arith.constant 0 : index
    %116 = vector.load %arg2[%c0_99, %c3_100, %c0_101, %c0_102] : memref<1x4x1x256xf32, #tpu.memory_space<vmem>>, vector<1x1x1x256xf32>
    %117 = vector.shape_cast %116 : vector<1x1x1x256xf32> to vector<1x256xf32>
    %118 = vector.broadcast %15 : f32 to vector<1x256xf32>
    %119 = arith.mulf %117, %118 : vector<1x256xf32>
    %120 = arith.addf %115, %119 : vector<1x256xf32>
    %121 = vector.broadcast %19 : f32 to vector<1x256xf32>
    %122 = arith.addf %120, %121 : vector<1x256xf32>
    %cst_103 = arith.constant 0.000000e+00 : f32
    %123 = vector.broadcast %cst_103 : f32 to vector<1x256xf32>
    %124 = arith.maximumf %122, %123 : vector<1x256xf32>
    %125 = vector.broadcast %23 : f32 to vector<1x256xf32>
    %126 = arith.mulf %124, %125 : vector<1x256xf32>
    %127 = arith.addf %101, %126 : vector<1x256xf32>
    %128 = vector.broadcast %24 : f32 to vector<1x256xf32>
    %129 = arith.addf %127, %128 : vector<1x256xf32>
    %130 = arith.negf %129 : vector<1x256xf32>
    %131 = math.exp %130 : vector<1x256xf32>
    %cst_104 = arith.constant 1.000000e+00 : f32
    %132 = vector.broadcast %cst_104 : f32 to vector<1x256xf32>
    %133 = arith.addf %132, %131 : vector<1x256xf32>
    %134 = arith.divf %132, %133 : vector<1x256xf32>
    %c0_105 = arith.constant 0 : index
    %c0_106 = arith.constant 0 : index
    %c0_107 = arith.constant 0 : index
    %135 = vector.load %arg7[%c0_105, %c0_106, %c0_107] : memref<1x1x256xf32, #tpu.memory_space<vmem>>, vector<1x1x256xf32>
    %136 = vector.shape_cast %135 : vector<1x1x256xf32> to vector<1x256xf32>
    %137 = vector.shape_cast %134 : vector<1x256xf32> to vector<1x1x256xf32>
    tpu.vector_store %arg7[%c0_105, %c0_106, %c0_107], %137 {strides = array<i32>} : memref<1x1x256xf32, #tpu.memory_space<vmem>>, vector<1x1x256xf32>,
    return
  }
  func.func @transform_0(%arg0: i32, %arg1: i32) -> (i32, i32, i32, i32) {
    %c0_i32 = arith.constant 0 : i32
    %c0_i32_0 = arith.constant 0 : i32
    %c0_i32_1 = arith.constant 0 : i32
    return %arg0, %c0_i32, %arg1, %c0_i32_0 : i32, i32, i32, i32
  }
  func.func @transform_1(%arg0: i32, %arg1: i32) -> (i32, i32) {
    %c0_i32 = arith.constant 0 : i32
    %c0_i32_0 = arith.constant 0 : i32
    %c0_i32_1 = arith.constant 0 : i32
    return %c0_i32, %c0_i32_0 : i32, i32
  }
  func.func @transform_2(%arg0: i32, %arg1: i32) -> i32 {
    %c0_i32 = arith.constant 0 : i32
    %c0_i32_0 = arith.constant 0 : i32
    return %c0_i32 : i32
  }
  func.func @transform_3(%arg0: i32, %arg1: i32) -> i32 {
    %c0_i32 = arith.constant 0 : i32
    %c0_i32_0 = arith.constant 0 : i32
    return %c0_i32 : i32
  }
  func.func @transform_4(%arg0: i32, %arg1: i32) -> i32 {
    %c0_i32 = arith.constant 0 : i32
    %c0_i32_0 = arith.constant 0 : i32
    return %c0_i32 : i32
  }
  func.func @transform_5(%arg0: i32, %arg1: i32) -> (i32, i32, i32) {
    %c0_i32 = arith.constant 0 : i32
    %c0_i32_0 = arith.constant 0 : i32
    return %arg0, %arg1, %c0_i32 : i32, i32, i32
  }
}

</mosaic_0001>

<bundles_post_ra>
// kernel: output_forward.1
= control target key start
LH: loop header
LB: loop body
LE: loop exit
PB: predicated region body
PF: predicated region fallthrough
CT: control target
= control target key end

     0   :  { %s836_s0 = inlined_call_operand.vmem [shape: f32[2,4,1,256], index: 0, kind: input, shape index: {}]   ;;  %s837_s1 = inlined_call_operand.vmem [shape: f32[4,4], index: 1, kind: input, shape index: {}]   ;;  %s838_s2 = inlined_call_operand.vmem [shape: f32[4], index: 2, kind: input, shape index: {}]   ;;  %s839_s3 = inlined_call_operand.vmem [shape: f32[4], index: 3, kind: input, shape index: {}]   ;;  %s840_s4 = inlined_call_operand.<no memory space> [shape: f32[1], index: 4, kind: input, shape index: {}]   ;;  %s841_s5 = inlined_call_operand.vmem [shape: f32[2,1,256], index: 5, kind: output, shape index: {}]  }
   0x1   :  { %10 = sst [smem:[#allocation2]] %s840_s4 }
   0x2   :  { %11 = vsyncpa [#allocation4], 0 }
   0x3   :  { %12 = vsyncpa [#allocation6], 0  ;;  %s748_s20 = smov 0   ;;  %s750_s21 = smov 0  }
   0x4   :  { %s752_s22 = smov 0  }
   0x5 LB: > { %s197_s24 = sshll.u32 %s838_s2, 4  ;;  %s536_s25 = sadd.s32 4294967295, %s710_s22   ;;  %s710_s22 = sphi %s752_s22, %s18_s22   ;;  %s706_s21 = sphi %s750_s21, %s845_s21   ;;  %s702_s20 = sphi %s748_s20, %s844_s20   ;;  %s198_s24 = int_to_ptr.vmem [resolvable:$true] %s197_s24 }
   0x6   : > { %p538_p0 = scmp.ge.s32.totalorder %s710_s22, 1  ;;  %p175_p1 = scmp.lt.s32.totalorder %s710_s22, 3 }
   0x7   : > { %p769_p2 = scmp.eq.s32.totalorder %s536_s25, 0  ;;  %s30_s28 = sadd.s32 1, %s706_s21 }
   0x8   : > { %p773_p3 = pnand %p538_p0, %p175_p1  ;;  %s187_s6 = sshll.u32 %s837_s1, 4  ;;  %s188_s6 = int_to_ptr.vmem [resolvable:$true] %s187_s6 }
   0x9   : > { %p32_p6 = scmp.ge.s32.totalorder %s30_s28, 2  ;;  %s207_s9 = sshll.u32 %s839_s3, 4  ;;  %s208_s9 = int_to_ptr.vmem [resolvable:$true] %s207_s9 }
   0xa   : > { %p588_p4 = pneg %p773_p3  ;;  %s712_s10 = smov [#allocation5]  }
   0xb   : > { %s847_s28 = smov (%p32_p6, %s30_s28), 0  ;;  %s713_s11 = smov [#allocation3]  }
   0xc   : > { %p589_p5 = pnand %p769_p2, %p588_p4  ;;  %s714_s12 = smov [#allocation7]  }
   0xd   : > { %234 = sbr.rel (%p773_p3) target bundleno = 90 (0x5a), region = 40 }
   0xe   : > { %594 = dma.vmem_to_smem (!%p589_p5), %s198_s24, 16, %s712_s10, [#allocation6]  }
   0xf   : > { %591 = dma.vmem_to_smem (!%p589_p5), %s188_s6, 64, %s713_s11, [#allocation4]  }
  0x10   : > { %597 = dma.vmem_to_smem (!%p589_p5), %s208_s9, 16, %s714_s12, [#allocation6]  }
  0x12   : > { %693 = dma.done.wait (%p769_p2), [#allocation4], 64  }
  0x13   : > { %695 = vsyncadd (%p769_p2), [#allocation4], 4294967232 }
  0x14   : > { %697 = dma.done.wait (%p769_p2), [#allocation6], 32  }
  0x15   : > { %699 = vsyncadd (%p769_p2), [#allocation6], 4294967264 }
  0x16   : > { %251 = sfence }
  0x17   : > { %p280_p7 = scmp.lt.s32.totalorder %s702_s20, 1  ;;  %s296_s13 = sld [smem:[#allocation3]] }
  0x18   : > { %s549_s14 = sld [smem:[#allocation3 + $0x1]] }
  0x19   : > { %s849_s20 = smov (!%p280_p7, %s702_s20), 1  ;;  %s550_s15 = sld [smem:[#allocation3 + $0x2]] }
  0x1a   : > { %s547_s16 = sshll.u32 %s849_s20, 3  ;;  %s808_s4 = sld [smem:[#allocation3 + $0x3]] }
  0x1b   : > { %s287_s19 = scalar_lea.vmem %s836_s0, %s547_s16  ;;  %s552_s23 = sld [smem:[#allocation3 + $0x80]] }
  0x1c   : > { %v321_v0 = vld [vmem:[%s287_s19] sm:$0x3]  ;;  %v570_v2 = vld [vmem:[%s287_s19 + $0x2] sm:$0x3]  ;;  %s553_s24 = sld [smem:[#allocation3 + $0x81]] }
  0x1d   : > { %v322_v1 = vstv %s296_s13  ;;  %s554_s25 = sld [smem:[#allocation3 + $0x82]]  ;;  %v571_v6 = vld [vmem:[%s287_s19 + $0x4] sm:$0x3]  ;;  %v572_v13 = vld [vmem:[%s287_s19 + $0x6] sm:$0x3] }
  0x1e   : > { %v326_v3 = vstv %s549_s14  ;;  %s810_s26 = sld [smem:[#allocation3 + $0x83]]  ;;  %v323_v4 = vmul.f32 %v322_v1, %v321_v0 }
  0x1f   : > { %v327_v5 = vmul.f32 %v570_v2, %v326_v3  ;;  %s556_s27 = sld [smem:[#allocation3 + $0x100]]  ;;  %v331_v7 = vstv %s550_s15 }
  0x20   : > { %s557_s29 = sld [smem:[#allocation3 + $0x101]]  ;;  %v332_v10 = vmul.f32 %v571_v6, %v331_v7  ;;  %v336_v14 = vstv %s808_s4  ;;  %s548_s4 = sshll.u32 %s849_s20, 1 }
  0x21   : > { %s558_s30 = sld [smem:[#allocation3 + $0x102]]  ;;  %v344_v8 = vstv %s552_s23  ;;  %v328_v9 = vadd.f32 %v327_v5, %v323_v4  ;;  %v337_v22 = vmul.f32 %v572_v13, %v336_v14 }
  0x22   : > { %s812_s6 = sld [smem:[#allocation3 + $0x103]]  ;;  %v345_v11 = vmul.f32 %v344_v8, %v321_v0  ;;  %v346_v12 = vstv %s553_s24 }
  0x23   : > { %s560_s7 = sld [smem:[#allocation3 + $0x180]]  ;;  %v347_v15 = vmul.f32 %v570_v2, %v346_v12  ;;  %v349_v16 = vstv %s554_s25  ;;  %v333_v21 = vadd.f32 %v332_v10, %v328_v9  ;;  %s295_s25 = scalar_lea.vmem %s841_s5, %s548_s4 }
  0x24   : > { %s561_s8 = sld [smem:[#allocation3 + $0x181]]  ;;  %v350_v17 = vmul.f32 %v571_v6, %v349_v16  ;;  %v352_v18 = vstv %s810_s26 }
  0x25   : > { %s562_s9 = sld [smem:[#allocation3 + $0x182]]  ;;  %v348_v19 = vadd.f32 %v347_v15, %v345_v11  ;;  %v361_v20 = vstv %s556_s27  ;;  %v353_v26 = vmul.f32 %v572_v13, %v352_v18  ;;  %v338_v34 = vadd.f32 %v337_v22, %v333_v21 }
  0x26   : > { %s816_s10 = sld [smem:[#allocation3 + $0x183]]  ;;  %v362_v23 = vmul.f32 %v361_v20, %v321_v0  ;;  %v363_v24 = vstv %s557_s29 }
  0x27   : > { %s312_s11 = sld [smem:[#allocation5]]  ;;  %v351_v25 = vadd.f32 %v350_v17, %v348_v19  ;;  %v364_v27 = vmul.f32 %v570_v2, %v363_v24  ;;  %v366_v28 = vstv %s558_s30  ;;  %v416_v17 = vlaneseq }
  0x28   : > { %s564_s12 = sld [smem:[#allocation5 + $0x1]]  ;;  %v367_v29 = vmul.f32 %v571_v6, %v366_v28  ;;  %v369_v30 = vstv %s812_s6 }
  0x29   : > { %s565_s13 = sld [smem:[#allocation5 + $0x2]]  ;;  %v365_v31 = vadd.f32 %v364_v27, %v362_v23  ;;  %v370_v32 = vmul.f32 %v572_v13, %v369_v30  ;;  %v378_v33 = vstv %s560_s7  ;;  %v354_v37 = vadd.f32 %v353_v26, %v351_v25 }
  0x2a   : > { %s819_s14 = sld [smem:[#allocation5 + $0x3]]  ;;  %v379_v35 = vmul.f32 %v378_v33, %v321_v0  ;;  %v380_v36 = vstv %s561_s8  ;;  %vm418_vm4 = vcmp.lt.s32.totalorder %v416_v17, 256 }
  0x2b   : > { %s316_s15 = sld [smem:[#allocation7]]  ;;  %v368_v38 = vadd.f32 %v367_v29, %v365_v31  ;;  %v381_v39 = vmul.f32 %v570_v2, %v380_v36  ;;  %v383_v40 = vstv %s562_s9 }
  0x2c   : > { %s567_s16 = sld [smem:[#allocation7 + $0x1]]  ;;  %v384_v41 = vmul.f32 %v571_v6, %v383_v40  ;;  %v386_v42 = vstv %s816_s10 }
  0x2d   : > { %s568_s17 = sld [smem:[#allocation7 + $0x2]]  ;;  %v339_v43 = vstv %s312_s11  ;;  %v371_v44 = vadd.f32 %v370_v32, %v368_v38  ;;  %v382_v45 = vadd.f32 %v381_v39, %v379_v35  ;;  %v387_v46 = vmul.f32 %v572_v13, %v386_v42 }
  0x2e   : > { %s569_s18 = sld [smem:[#allocation7 + $0x3]]  ;;  %v340_v47 = vadd.f32 %v339_v43, %v338_v34  ;;  %v355_v48 = vstv %s564_s12 }
  0x2f   : > { %v356_v49 = vadd.f32 %v355_v48, %v354_v37  ;;  %v372_v50 = vstv %s565_s13  ;;  %v385_v51 = vadd.f32 %v384_v41, %v382_v45  ;;  %s320_s19 = sld [smem:[#allocation2]] }
  0x30   : > { %v341_v52 = vmax.f32 %v340_v47, 0.0  ;;  %v373_v53 = vadd.f32 %v372_v50, %v371_v44  ;;  %v389_v54 = vstv %s819_s14 }
  0x31   : > { %v342_v55 = vstv %s316_s15  ;;  %v357_v56 = vmax.f32 %v356_v49, 0.0  ;;  %v388_v57 = vadd.f32 %v387_v46, %v385_v51 }
  0x32   : > { %v343_v58 = vmul.f32 %v342_v55, %v341_v52  ;;  %v358_v59 = vstv %s567_s16  ;;  %v374_v60 = vmax.f32 %v373_v53, 0.0 }
  0x33   : > { %v359_v61 = vmul.f32 %v358_v59, %v357_v56  ;;  %v375_v62 = vstv %s568_s17  ;;  %v390_v63 = vadd.f32 %v389_v54, %v388_v57 }
  0x34   : > { %v376_v0 = vmul.f32 %v375_v62, %v374_v60  ;;  %v392_v1 = vstv %s569_s18 }
  0x35   : > { %v360_v2 = vadd.f32 %v359_v61, %v343_v58  ;;  %v391_v3 = vmax.f32 %v390_v63, 0.0  ;;  %v395_v6 = vstv %s320_s19 }
  0x37   : > { %v377_v4 = vadd.f32 %v376_v0, %v360_v2  ;;  %v393_v5 = vmul.f32 %v392_v1, %v391_v3 }
  0x39   : > { %v394_v7 = vadd.f32 %v393_v5, %v377_v4 }
  0x3b   : > { %v396_v8 = vadd.f32 %v395_v6, %v394_v7 }
  0x3d   : > { %v573_v9 = vmul.f32 -1.442695, %v396_v8 }
  0x3f   : > { %631 = vpow2.f32 %v573_v9 }
  0x45   : > { %v632_v10 = vpop.eup %631 }
  0x46   : > { %v400_v11 = vadd.f32 1.0, %v632_v10 }
  0x48   : > { %633 = vrcp.f32 %v400_v11  ;;  %v412_v14 = vand.u32 2147483648, %v400_v11  ;;  %vm406_vm0 = vweird.f32 %v400_v11  ;;  %v410_v16 = vand.u32 2147483647, %v400_v11 }
  0x4a   : > { %v413_v19 = vor.u32 1.1754944e-38, %v412_v14  ;;  %vm411_vm3 = vcmp.eq.f32.partialorder %v410_v16, 8.507059e+37 }
  0x4e   : > { %v634_v12 = vpop.eup %633 }
  0x4f   : > { %v402_v13 = vmul.f32 %v634_v12, %v400_v11  ;;  %vm407_vm1 = vweird.f32 %v634_v12 }
  0x50   : > { %vm408_vm2 = vmor %vm406_vm0, %vm407_vm1 }
  0x51   : > { %v403_v15 = vsub.f32 1.0, %v402_v13 }
  0x53   : > { %v404_v18 = vmul.f32 %v634_v12, %v403_v15 }
  0x55   : > { %v405_v20 = vadd.f32 %v634_v12, %v404_v18 }
  0x57   : > { %v409_v21 = vsel %vm408_vm2, %v634_v12, %v405_v20 }
  0x58   : > { %v414_v22 = vsel %vm411_vm3, %v413_v19, %v409_v21 }
  0x59   : > { %420 = vst.msk [vmem:[%s295_s25] sm:$0x3] %vm418_vm4, %v414_v22 }
  0x5a PF: > { %s18_s22 = sadd.s32 1, %s710_s22   ;;  %s844_s20 = smov %s706_s21 }
  0x5b   : > { %p15_p8 = scmp.ge.s32.totalorder %s18_s22, 4   ;;  %s845_s21 = smov %s847_s28 }
  0x5d   :  { %17 = sbr.rel (!%p15_p8) target bundleno = 5 (0x5), region = 86 }
  0x62   :  { %448 = vsyncpa [#allocation4], 1 }
  0x63   :  { %450 = vsyncpa [#allocation4 + $0x1], 1 }
  0x64   :  { %451 = vsyncpa [#allocation6], 1 }

</bundles_post_ra>
